<compile_context>
chip_gen: v7x
topology: tpu7x:2x2x1
jax: 0.10.0
libtpu: 0.0.40
codegen_flags: <defaults>
</compile_context>

<pallas_src>
import functools

import jax
import jax.numpy as jnp
from jax.experimental import pallas as pl
from jax.experimental.pallas import tpu as pltpu


def _round_up(x, m):
    return (x + m - 1) // m * m


def _round_down(x, m):
    return x // m * m


def _matmul_bias_relu_kernel(x_ref, w_ref, b_ref, o_ref, *, use_act):
    """Fused (im2col-conv) matmul + folded-BN bias + optional ReLU.

    x_ref : (TR, Kp)        im2col patches tile (rows of N*H*W, padded K)
    w_ref : (Kp, TN/Coutp)  conv weights with BN scale folded in (zero-padded)
    b_ref : (1, TN/Coutp)   folded BN bias (f32)
    o_ref : (TR, TN/Coutp)
    """
    acc = jnp.dot(x_ref[...], w_ref[...], preferred_element_type=jnp.float32)
    y = acc + b_ref[...]
    if use_act:
        y = jnp.maximum(y, 0.0)
    o_ref[...] = y.astype(o_ref.dtype)


def _vmem_budget_bytes():
    """Generation-aware (v5e/v6e: 128 MiB, v7x: 64 MiB) tiling budget + vmem cap."""
    try:
        phys = int(pltpu.get_tpu_info().vmem_capacity_bytes)
    except Exception:
        phys = 64 * 1024 * 1024  # conservative fallback (v7x size)
    budget = min(phys // 3, 32 * 1024 * 1024)   # ~21 MiB on v7x, 32 MiB on v5e/v6e
    limit_cap = (phys * 3) // 4                 # ~48 MiB on v7x, 96 MiB on v5e/v6e
    return budget, limit_cap


def conv_bn_act(x, weight_oihw, gamma, beta, running_mean, running_var,
                eps=1e-5, use_act=True, compute_dtype=jnp.bfloat16,
                input_layout="NCHW", output_layout="NCHW"):
    """Forward of ConvBNAct (kernel_size=3, stride=1, padding=(k-1)//2, groups=1)."""
    # TODO(synk): stride!=1, groups!=1 and use_lab=True (LearnableAffineBlock) not implemented.
    # TODO(synk): for large-Cin layers on v5e, an in-kernel im2col (streamed NHWC row
    # slabs) would avoid the ~9x HBM activation inflation of the wrapper-side im2col.
    if input_layout == "NCHW":
        x_nhwc = jnp.transpose(x, (0, 2, 3, 1))
    else:
        x_nhwc = x
    N, H, W, Cin = x_nhwc.shape
    Cout, Cin_w, KH, KW = weight_oihw.shape
    assert Cin_w == Cin, "groups != 1 not supported"
    assert KH == KW, "only square kernels supported"
    pad = (KH - 1) // 2

    cdt = jnp.dtype(compute_dtype)
    out_dtype = x.dtype

    # ---- fold BatchNorm (eval semantics, running stats) into weights + bias ----
    scale = gamma.astype(jnp.float32) / jnp.sqrt(running_var.astype(jnp.float32) + eps)
    bias = beta.astype(jnp.float32) - running_mean.astype(jnp.float32) * scale

    Kdim = KH * KW * Cin
    Kp = _round_up(Kdim, 128)          # lane-dense contraction dim
    Coutp = _round_up(Cout, 128)       # lane-dense output dim
    rows = N * H * W

    # ---- im2col in the wrapper; the K-pad is fused in as one extra zero "tap" ----
    x_c = x_nhwc.astype(cdt)
    x_padded = jnp.pad(x_c, ((0, 0), (pad, pad), (pad, pad), (0, 0)))
    taps = [x_padded[:, kh:kh + H, kw:kw + W, :] for kh in range(KH) for kw in range(KW)]
    if Kp > Kdim:
        taps.append(jnp.zeros((N, H, W, Kp - Kdim), dtype=cdt))
    patches2d = jnp.concatenate(taps, axis=-1).reshape(rows, Kp)

    # (Cout, Cin, KH, KW) -> (KH*KW*Cin, Cout), BN scale folded, padded to (Kp, Coutp).
    w2d = jnp.transpose(weight_oihw, (2, 3, 1, 0)).reshape(Kdim, Cout).astype(jnp.float32)
    w2d = (w2d * scale[None, :]).astype(cdt)
    w2d = jnp.pad(w2d, ((0, Kp - Kdim), (0, Coutp - Cout)))
    bias2d = jnp.pad(bias, (0, Coutp - Cout)).reshape(1, Coutp).astype(jnp.float32)

    in_b = jnp.dtype(cdt).itemsize
    out_b = jnp.dtype(out_dtype).itemsize
    budget, limit_cap = _vmem_budget_bytes()
    align = 16 if in_b < 4 else 8      # bf16 packs 16 sublanes per vreg

    # ---- preferred path: weight fully VMEM-resident, 1-D grid over row tiles ----
    w_resident_bytes = 2 * Kp * Coutp * in_b + 2 * Coutp * 4
    per_row_1d = 2 * Kp * in_b + 2 * Coutp * out_b + Coutp * 4
    tr_1d = (_round_down(int((budget - w_resident_bytes) // per_row_1d), align)
             if budget > w_resident_bytes else 0)
    use_1d = tr_1d >= 128

    if use_1d:
        TR = min(tr_1d, 2048)
        # Keep >= 2 row tiles when the problem allows (both v7x TensorCores get work).
        if rows >= 2 * align:
            TR = min(TR, _round_up((rows + 1) // 2, align))
        else:
            TR = min(TR, _round_up(rows, align))
        TR = _round_down(TR, 256) if TR >= 256 else _round_down(max(TR, align), align)
        TR = max(TR, align)
        rows_p = _round_up(rows, TR)
        if rows_p > rows:
            patches2d = jnp.pad(patches2d, ((0, rows_p - rows), (0, 0)))

        grid = (rows_p // TR,)
        in_specs = [
            pl.BlockSpec((TR, Kp), lambda r: (r, 0)),       # patches: streamed once
            pl.BlockSpec((Kp, Coutp), lambda r: (0, 0)),    # weights: resident
            pl.BlockSpec((1, Coutp), lambda r: (0, 0)),     # bias: resident
        ]
        out_specs = pl.BlockSpec((TR, Coutp), lambda r: (r, 0))
        dims = ("parallel",)
        vmem_need = (2 * TR * Kp * in_b + 2 * Kp * Coutp * in_b + 2 * Coutp * 4
                     + 2 * TR * Coutp * out_b + TR * Coutp * 4)
        weight_reads = 1
    else:
        # ---- fallback: 2-D grid, rows OUTER so the big patch matrix is read once ----
        TN = 256 if Coutp % 256 == 0 else 128
        fixed_2d = 2 * Kp * TN * in_b + 2 * TN * 4
        per_row_2d = 2 * Kp * in_b + 2 * TN * out_b + TN * 4
        tr_2d = _round_down(int(max(budget - fixed_2d, align * per_row_2d) // per_row_2d), align)
        TR = max(align, min(tr_2d, 2048))
        TR = _round_down(TR, 256) if TR >= 256 else TR
        rows_p = _round_up(rows, TR)
        if rows_p > rows:
            patches2d = jnp.pad(patches2d, ((0, rows_p - rows), (0, 0)))

        grid = (rows_p // TR, Coutp // TN)
        in_specs = [
            pl.BlockSpec((TR, Kp), lambda r, c: (r, 0)),    # patches: read once total
            pl.BlockSpec((Kp, TN), lambda r, c: (0, c)),    # small weight re-read per row tile
            pl.BlockSpec((1, TN), lambda r, c: (0, c)),
        ]
        out_specs = pl.BlockSpec((TR, TN), lambda r, c: (r, c))
        dims = ("parallel", "parallel")
        vmem_need = (2 * TR * Kp * in_b + 2 * Kp * TN * in_b + 2 * TN * 4
                     + 2 * TR * TN * out_b + TR * TN * 4)
        weight_reads = rows_p // TR

    vmem_limit = int(min(limit_cap, max(4 * 1024 * 1024, int(vmem_need * 1.25))))

    cost = pl.CostEstimate(
        flops=2 * rows_p * Kp * Coutp,
        transcendentals=0,
        bytes_accessed=int(rows_p * Kp * in_b
                           + weight_reads * Kp * Coutp * in_b
                           + Coutp * 4
                           + rows_p * Coutp * out_b),
    )

    kernel = functools.partial(_matmul_bias_relu_kernel, use_act=use_act)

    out2d = pl.pallas_call(
        kernel,
        out_shape=jax.ShapeDtypeStruct((rows_p, Coutp), out_dtype),
        grid_spec=pltpu.PrefetchScalarGridSpec(
            num_scalar_prefetch=0,
            grid=grid,
            in_specs=in_specs,
            out_specs=out_specs,
        ),
        compiler_params=pltpu.CompilerParams(
            dimension_semantics=dims,
            vmem_limit_bytes=vmem_limit,
        ),
        cost_estimate=cost,
    )(patches2d, w2d, bias2d)

    out = out2d[:rows, :Cout].reshape(N, H, W, Cout)
    if output_layout == "NCHW":
        out = jnp.transpose(out, (0, 3, 1, 2))
    return out


def _reference(x_nchw, weight_oihw, gamma, beta, mean, var, eps=1e-5):
    y = jax.lax.conv_general_dilated(
        x_nchw, weight_oihw, window_strides=(1, 1), padding=((1, 1), (1, 1)),
        dimension_numbers=("NCHW", "OIHW", "NCHW"),
    )
    s = (gamma / jnp.sqrt(var + eps)).reshape(1, -1, 1, 1)
    b = (beta - mean * gamma / jnp.sqrt(var + eps)).reshape(1, -1, 1, 1)
    return jnp.maximum(y * s + b, 0.0)


if __name__ == "__main__":
    # Small deterministic example: ConvBNAct(in_channels=4, out_channels=8)
    N, Cin, H, W = 2, 4, 16, 16
    Cout, K = 8, 3

    key = jax.random.PRNGKey(0)
    kx, kw, kg, kb, km, kv = jax.random.split(key, 6)

    x = jax.random.normal(kx, (N, Cin, H, W), dtype=jnp.float32)
    weight = jax.random.normal(kw, (Cout, Cin, K, K), dtype=jnp.float32) * 0.1
    gamma = jax.random.normal(kg, (Cout,), dtype=jnp.float32) * 0.1 + 1.0
    beta = jax.random.normal(kb, (Cout,), dtype=jnp.float32) * 0.1
    running_mean = jax.random.normal(km, (Cout,), dtype=jnp.float32) * 0.1
    running_var = jax.random.uniform(kv, (Cout,), dtype=jnp.float32, minval=0.5, maxval=1.5)

    ref = _reference(x, weight, gamma, beta, running_mean, running_var)

    # f32 operand path (tight tolerance)
    out_f32 = conv_bn_act(x, weight, gamma, beta, running_mean, running_var,
                          compute_dtype=jnp.float32)
    out_f32 = jax.block_until_ready(out_f32)
    assert out_f32.shape == (N, Cout, H, W)
    assert jnp.allclose(out_f32, ref, rtol=1e-4, atol=1e-4), "f32 path mismatch vs reference"

    # default bf16 operand path (f32 accumulation; looser tolerance expected)
    out_bf16 = conv_bn_act(x, weight, gamma, beta, running_mean, running_var)
    out_bf16 = jax.block_until_ready(out_bf16)
    assert out_bf16.shape == (N, Cout, H, W)
    assert jnp.allclose(out_bf16, ref, rtol=2e-2, atol=2e-2), "bf16 path mismatch vs reference"

    print("KERNEL_OK")
</pallas_src>

<mosaic_0001>
module attributes {stable_mosaic.version = 11 : i64} {
  func.func @_matmul_bias_relu_kernel(%arg0: i32, %arg1: memref<256x128xf32, #tpu.memory_space<vmem>>, %arg2: memref<128x128xf32, #tpu.memory_space<vmem>>, %arg3: memref<1x128xf32, #tpu.memory_space<vmem>>, %arg4: memref<256x128xf32, #tpu.memory_space<vmem>>) attributes {dimension_semantics = [#tpu.dimension_semantics<parallel>], iteration_bounds = array<i64: 2>, scalar_prefetch = 0 : i64, scratch_operands = 0 : i64, tpu.core_type = #tpu.core_type<tc>, window_params = [{transform_indices = @transform_0, window_bounds = array<i64: 256, 128>}, {pipeline_mode = #tpu.pipeline_mode<synchronous>, transform_indices = @transform_1, window_bounds = array<i64: 128, 128>}, {pipeline_mode = #tpu.pipeline_mode<synchronous>, transform_indices = @transform_2, window_bounds = array<i64: 1, 128>}, {transform_indices = @transform_3, window_bounds = array<i64: 256, 128>}]} {
    %c0 = arith.constant 0 : index
    %c0_0 = arith.constant 0 : index
    %0 = vector.load %arg1[%c0, %c0_0] : memref<256x128xf32, #tpu.memory_space<vmem>>, vector<256x128xf32>
    %c0_1 = arith.constant 0 : index
    %c0_2 = arith.constant 0 : index
    %1 = vector.load %arg2[%c0_1, %c0_2] : memref<128x128xf32, #tpu.memory_space<vmem>>, vector<128x128xf32>
    %cst = arith.constant dense<0.000000e+00> : vector<256x128xf32>
    %2 = tpu.matmul %0, %1, %cst {dimension_numbers = #tpu.dot_dimension_numbers<[1], [0], [0], [1], [0, 0, 1, 1], [], []>} : vector<256x128xf32>, vector<128x128xf32>, vector<256x128xf32> -> vector<256x128xf32>
    %c0_3 = arith.constant 0 : index
    %c0_4 = arith.constant 0 : index
    %3 = vector.load %arg3[%c0_3, %c0_4] : memref<1x128xf32, #tpu.memory_space<vmem>>, vector<1x128xf32>
    %4 = vector.broadcast %3 : vector<1x128xf32> to vector<256x128xf32>
    %5 = arith.addf %2, %4 : vector<256x128xf32>
    %cst_5 = arith.constant 0.000000e+00 : f32
    %6 = vector.broadcast %cst_5 : f32 to vector<256x128xf32>
    %7 = arith.maximumf %5, %6 : vector<256x128xf32>
    %c0_6 = arith.constant 0 : index
    %c0_7 = arith.constant 0 : index
    %8 = vector.load %arg4[%c0_6, %c0_7] : memref<256x128xf32, #tpu.memory_space<vmem>>, vector<256x128xf32>
    tpu.vector_store %arg4[%c0_6, %c0_7], %7 {strides = array<i32>} : memref<256x128xf32, #tpu.memory_space<vmem>>, vector<256x128xf32>,
    return
  }
  func.func @transform_0(%arg0: i32) -> (i32, i32) {
    %c0_i32 = arith.constant 0 : i32
    %c0_i32_0 = arith.constant 0 : i32
    return %arg0, %c0_i32 : i32, i32
  }
  func.func @transform_1(%arg0: i32) -> (i32, i32) {
    %c0_i32 = arith.constant 0 : i32
    %c0_i32_0 = arith.constant 0 : i32
    %c0_i32_1 = arith.constant 0 : i32
    return %c0_i32, %c0_i32_0 : i32, i32
  }
  func.func @transform_2(%arg0: i32) -> (i32, i32) {
    %c0_i32 = arith.constant 0 : i32
    %c0_i32_0 = arith.constant 0 : i32
    %c0_i32_1 = arith.constant 0 : i32
    return %c0_i32, %c0_i32_0 : i32, i32
  }
  func.func @transform_3(%arg0: i32) -> (i32, i32) {
    %c0_i32 = arith.constant 0 : i32
    %c0_i32_0 = arith.constant 0 : i32
    return %arg0, %c0_i32 : i32, i32
  }
}

</mosaic_0001>

<bundles_post_ra>
// kernel: tpu_custom_call.1
= control target key start
LH: loop header
LB: loop body
LE: loop exit
PB: predicated region body
PF: predicated region fallthrough
CT: control target
= control target key end

     0   :  { %8 = vsyncpa [#allocation3], 0  ;;  %s1377_s0 = inlined_call_operand.hbm [shape: f32[512,128], index: 0, kind: input, shape index: {}]   ;;  %s1378_s1 = inlined_call_operand.hbm [shape: f32[128,128], index: 1, kind: input, shape index: {}]   ;;  %s1379_s2 = inlined_call_operand.vmem [shape: f32[1,128], index: 2, kind: input, shape index: {}]   ;;  %s1380_s3 = inlined_call_operand.hbm [shape: f32[512,128], index: 3, kind: output, shape index: {}]  }
   0x1   :  { %10 = vsyncpa [#allocation3 + $0x1], 0 }
   0x2   :  { %11 = vsyncpa [#allocation6], 0 }
   0x3   :  { %12 = vsyncpa [#allocation4], 0 }
   0x4   :  { %14 = vsyncpa [#allocation4 + $0x1], 0  ;;  %s1060_s12 = smov 0   ;;  %s1062_s13 = smov 0  }
   0x5   :  { %s1064_s14 = smov 0   ;;  %s1066_s15 = smov 0  }
   0x6 LB: > { %s1081_s16 = sadd.s32 4294967295, %s1031_s15   ;;  %s647_s17 = sadd.s32 4294967294, %s1031_s15   ;;  %s1031_s15 = sphi %s1066_s15, %s1400_s15   ;;  %s1027_s14 = sphi %s1064_s14, %s1399_s14   ;;  %s1023_s13 = sphi %s1062_s13, %s1398_s13   ;;  %s1019_s12 = sphi %s1060_s12, %s1397_s12  }
   0x7   : > { %p40_p0 = scmp.ne.s32.totalorder %s1023_s13, %s1019_s12  ;;  %p1381_p1 = scmp.eq.s32.totalorder %s1081_s16, 0 }
   0x8   : > { %p112_p3 = scmp.eq.s32.totalorder %s647_s17, 1  ;;  %p648_p5 = scmp.ge.s32.totalorder %s1031_s15, 1 }
   0x9   : > { %p1090_p4 = por %p1381_p1, %p40_p0  ;;  %p119_p7 = scmp.lt.s32.totalorder %s1031_s15, 3 }
   0xa   : > { %p1095_p6 = por %p112_p3, %p40_p0  ;;  %s1033_s21 = smov [#allocation5]  }
   0xb   : > { %s1384_s18 = scalar_select %p1090_p4, 1, 0 }
   0xc   : > { %s1385_s19 = scalar_select %p1095_p6, 1, 0 }
   0xd   : > { %p1100_p8 = pnand %p648_p5, %p119_p7  ;;  %s131_s22 = sshll.u32 %s1033_s21, 4  ;;  %s1104_s22 = int_to_ptr.vmem [resolvable:$true] %s131_s22 }
   0xe   : > { %s1116_s24 = sadd.s32 1, %s1031_s15   ;;  %s27_s25 = sadd.s32 1, %s1027_s14 }
   0xf   : > { %s1386_s20 = scalar_select %p1100_p8, 1, 0 }
  0x10   : > { %p850_p9 = pneg %p1100_p8  ;;  %s24_s26 = ssub.s32 %s1031_s15, %s1116_s24 }
  0x11   : > { %s903_s29 = scalar_lea.hbm %s1378_s1, 2048 }
  0x12   : > { %p1111_p11 = pnand %p850_p9, %p1381_p1  ;;  %p904_p12 = scmp.ne.s32.totalorder %s1378_s1, %s903_s29 }
  0x13   : > { %p910_p5 = scmp.lt.u32.totalorder %s903_s29, %s1378_s1 }
  0x14   : > { %p905_p13 = pneg %p1111_p11 }
  0x16   : > { %p906_p0 = pnand %p905_p13, %p904_p12 }
  0x18   : > { %p907_p3 = pneg %p906_p0 }
  0x1a   : > { %p912_p7 = pnand %p910_p5, %p907_p3 }
  0x1c   : > { %915 = shalt.err (!%p912_p7)
}
  0x1d   : > { %s916_s7 = scalar_lea.vmem %s1104_s22, 2048  ;;  %p924_p2 = scmp.lt.s32.totalorder %s1104_s22, %s1104_s22 }
  0x1e   : > { %p917_p9 = scmp.ne.s32.totalorder %s1104_s22, %s916_s7  ;;  %p925_p6 = scmp.lt.s32.totalorder %s916_s7, %s916_s7 }
  0x20   : > { %p919_p10 = pnand %p917_p9, %p905_p13  ;;  %p926_p4 = por %p925_p6, %p924_p2 }
  0x22   : > { %p920_p1 = pneg %p919_p10 }
  0x24   : > { %p927_p8 = pnand %p926_p4, %p920_p1 }
  0x26   : > { %930 = shalt.err (!%p927_p8)
}
  0x27   : > { %s1034_s8 = smov 128   ;;  %s1035_s9 = smov 8  }
  0x28   : > { %853 = dma.hbm_to_vmem [thread:$0]  (!%p1111_p11), %s1378_s1, 2048, %s1104_s22, [#allocation6], %s1034_s8, %s1034_s8, %s1035_s9  }
  0x29   : > { %p25_p1 = scmp.eq.s32.totalorder %s24_s26, 0  ;;  %p34_p2 = scmp.ne.s32.totalorder %s1027_s14, %s1023_s13 }
  0x2a   : > { %p35_p4 = scmp.eq.s32.totalorder %s1031_s15, 0  ;;  %p863_p6 = scmp.lt.s32.totalorder %s1031_s15, 2 }
  0x2b   : > { %s1150_s17 = scalar_select %p25_p1, %s1027_s14, %s27_s25  }
  0x2c   : > { %p36_p8 = por %p35_p4, %p34_p2  ;;  %p1388_p10 = scmp.eq.s32.totalorder %s1081_s16, 1 }
  0x2d   : > { %s148_s23 = sand.u32 1, %s1027_s14   ;;  %s664_s27 = sshll.u32 %s1031_s15, 12 }
  0x2e   : > { %p1154_p12 = por %p1388_p10, %p34_p2  ;;  %s651_s28 = sshll.u32 %s148_s23, 8 }
  0x2f   : > { %s1163_s4 = scalar_lea.hbm %s1377_s0, %s664_s27  ;;  %s152_s22 = scalar_lea.vmem [#allocation2], %s651_s28 }
  0x30   : > { %s159_s25 = sshll.u32 %s152_s22, 4  ;;  %p1165_p11 = pnand %p863_p6, %p36_p8  ;;  %s1169_s25 = int_to_ptr.vmem [resolvable:$true] %s159_s25 }
  0x31   : > { %s1171_s5 = scalar_lea.sflag [#allocation3], %s148_s23  ;;  %s931_s6 = scalar_lea.hbm %s1163_s4, 4096 }
  0x32   : > { %p932_p13 = scmp.ne.s32.totalorder %s1163_s4, %s931_s6  ;;  %p933_p0 = pneg %p1165_p11 }
  0x33   : > { %s936_s11 = scalar_lea.hbm %s1377_s0, 8192  ;;  %p937_p7 = scmp.lt.u32.totalorder %s1163_s4, %s1377_s0 }
  0x34   : > { %p934_p3 = pnand %p933_p0, %p932_p13  ;;  %p938_p9 = scmp.lt.u32.totalorder %s936_s11, %s931_s6 }
  0x35   : > { %p940_p2 = scmp.lt.u32.totalorder %s931_s6, %s1163_s4 }
  0x36   : > { %p935_p5 = pneg %p934_p3  ;;  %p939_p1 = por %p938_p9, %p937_p7 }
  0x38   : > { %p941_p4 = por %p940_p2, %p939_p1 }
  0x3a   : > { %p942_p6 = pnand %p941_p4, %p935_p5 }
  0x3c   : > { %945 = shalt.err (!%p942_p6)
}
  0x3d   : > { %s946_s23 = scalar_lea.vmem %s1169_s25, 4096  ;;  %s1036_s29 = smov [#allocation2]  }
  0x3e   : > { %p947_p8 = scmp.ne.s32.totalorder %s1169_s25, %s946_s23  ;;  %s951_s30 = sshll.u32 %s1036_s29, 4  ;;  %s952_s30 = int_to_ptr.vmem [resolvable:$false] %s951_s30 }
  0x3f   : > { %s953_s22 = scalar_lea.vmem %s952_s30, 8192  ;;  %p954_p3 = scmp.lt.s32.totalorder %s1169_s25, %s952_s30 }
  0x40   : > { %p949_p10 = pnand %p947_p8, %p933_p0  ;;  %p955_p7 = scmp.lt.s32.totalorder %s953_s22, %s946_s23 }
  0x42   : > { %p950_p13 = pneg %p949_p10  ;;  %p956_p9 = por %p955_p7, %p954_p3 }
  0x44   : > { %p957_p1 = pnand %p956_p9, %p950_p13 }
  0x46   : > { %960 = shalt.err (!%p957_p1)
}
  0x47   : > { %857 = dma.hbm_to_vmem [thread:$0]  (!%p1165_p11), %s1163_s4, 4096, %s1169_s25, %s1171_s5, %s1034_s8, %s1034_s8, %s1035_s9  }
  0x48   : > { %p1391_p0 = scmp.ne.s32.totalorder %s1386_s20, 0 }
  0x49   : > { %s1205_s6 = sand.u32 (!%p1391_p0), 1, %s1023_s13   ;;  %p1392_p5 = scmp.ne.s32.totalorder (!%p1391_p0), %s1384_s18, 0 }
  0x4a   : > { %171 = sbr.rel (%p1391_p0) target bundleno = 380 (0x17c), region = 32  ;;  %s655_s7 = sshll.u32 (!%p1391_p0), %s1205_s6, 8 }
  0x4b   : > { %s174_s10 = scalar_lea.sflag (!%p1391_p0), [#allocation3], %s1205_s6  ;;  %s1211_s26 = scalar_lea.vmem (!%p1391_p0), [#allocation2], %s655_s7 }
  0x51   : > { %1006 = dma.done.wait (%p1392_p5), %s174_s10, 4096  }
  0x52   : > { %1008 = vsyncadd (%p1392_p5), %s174_s10, 4294963200  ;;  %p1393_p11 = scmp.eq.s32.totalorder %s1081_s16, 0 }
  0x54   : > { %1010 = dma.done.wait (%p1393_p11), [#allocation6], 2048   ;;  %p1394_p2 = pmov %p1393_p11 }
  0x55   : > { %v238_v0 = vld [vmem:[#allocation5] sm:$0xff]  ;;  %v239_v1 = vld [vmem:[#allocation5 + $0x8] sm:$0xff]  ;;  %v240_v2 = vld [vmem:[#allocation5 + $0x10] sm:$0xff]  ;;  %s1264_s8 = scalar_lea.vmem [#allocation7], %s655_s7  ;;  %s665_s9 = sshll.u32 %s1081_s16, 12 }
  0x56   : > { %1012 = vsyncadd (%p1394_p2), [#allocation6], 4294965248  ;;  %v794_v3 = vpack.c.bf16 %v239_v1, %v238_v0  ;;  %v241_v4 = vld [vmem:[#allocation5 + $0x18] sm:$0xff]  ;;  %v242_v6 = vld [vmem:[#allocation5 + $0x20] sm:$0xff]  ;;  %s564_s4 = sshll.u32 %s1264_s8, 4  ;;  %s1327_s5 = scalar_lea.hbm %s1380_s3, %s665_s9  ;;  %s1329_s4 = int_to_ptr.vmem [resolvable:$true] %s564_s4 }
  0x57   : > { %v798_v5 = vpack.c.bf16 %v241_v4, %v240_v2  ;;  %v243_v7 = vld [vmem:[#allocation5 + $0x28] sm:$0xff]  ;;  %v206_v9 = vld [vmem:[%s1211_s26] sm:$0xff]  ;;  %v244_v11 = vld [vmem:[#allocation5 + $0x30] sm:$0xff]  ;;  %s551_s11 = scalar_lea.sflag [#allocation4], %s1205_s6  ;;  %s961_s27 = scalar_lea.vmem %s1329_s4, 4096 }
  0x58   : > { %795 = vmatprep.subr.bf16.mxu0 %v794_v3  ;;  %826 = vmatprep.subr.bf16.mxu1 %v794_v3  ;;  %v802_v8 = vpack.c.bf16 %v243_v7, %v242_v6  ;;  %v222_v10 = vld [vmem:[%s1211_s26 + $0x80] sm:$0xff]  ;;  %v245_v12 = vld [vmem:[#allocation5 + $0x38] sm:$0xff]  ;;  %v247_v15 = vld [vmem:[#allocation5 + $0x48] sm:$0xff]  ;;  %p962_p4 = scmp.ne.s32.totalorder %s1329_s4, %s961_s27  ;;  %s1037_s28 = smov [#allocation7]  }
  0x59   : > { %797 = vmatpush3.bf16.msra.mxu0 %v794_v3  ;;  %834 = vmatpush3.bf16.msra.mxu1 %v794_v3  ;;  %v806_v13 = vpack.c.bf16 %v245_v12, %v244_v11  ;;  %v246_v14 = vld [vmem:[#allocation5 + $0x40] sm:$0xff]  ;;  %v248_v17 = vld [vmem:[#allocation5 + $0x50] sm:$0xff]  ;;  %v249_v18 = vld [vmem:[#allocation5 + $0x58] sm:$0xff]  ;;  %s965_s23 = sshll.u32 %s1037_s28, 4  ;;  %s966_s23 = int_to_ptr.vmem [resolvable:$false] %s965_s23 }
  0x5a   : > { %799 = vmatprep.subr.bf16.mxu0 %v798_v5  ;;  %827 = vmatprep.subr.bf16.mxu1 %v798_v5  ;;  %v810_v16 = vpack.c.bf16 %v247_v15, %v246_v14  ;;  %v814_v19 = vpack.c.bf16 %v249_v18, %v248_v17  ;;  %v250_v20 = vld [vmem:[#allocation5 + $0x60] sm:$0xff]  ;;  %v251_v21 = vld [vmem:[#allocation5 + $0x68] sm:$0xff]  ;;  %v252_v23 = vld [vmem:[#allocation5 + $0x70] sm:$0xff]  ;;  %p963_p6 = pnand %p962_p4, %p1154_p12  ;;  %s967_s29 = scalar_lea.vmem %s966_s23, 8192 }
  0x5b   : > { %746 = vmatprep.mubr.f32.mxu0 %v206_v9  ;;  %770 = vmatprep.mubr.f32.mxu1 %v222_v10  ;;  %v818_v22 = vpack.c.bf16 %v251_v21, %v250_v20  ;;  %v253_v24 = vld [vmem:[#allocation5 + $0x78] sm:$0xff]  ;;  %v207_v26 = vld [vmem:[%s1211_s26 + $0x8] sm:$0xff]  ;;  %v208_v28 = vld [vmem:[%s1211_s26 + $0x10] sm:$0xff]  ;;  %p968_p10 = scmp.lt.s32.totalorder %s1329_s4, %s966_s23  ;;  %p969_p13 = scmp.lt.s32.totalorder %s967_s29, %s961_s27 }
  0x5c   : > { %v822_v25 = vpack.c.bf16 %v253_v24, %v252_v23  ;;  %v223_v27 = vld [vmem:[%s1211_s26 + $0x88] sm:$0xff]  ;;  %v224_v29 = vld [vmem:[%s1211_s26 + $0x90] sm:$0xff]  ;;  %v209_v30 = vld [vmem:[%s1211_s26 + $0x18] sm:$0xff]  ;;  %p964_p8 = pneg %p963_p6 }
  0x5d   : > { %801 = vmatpush3.bf16.msra.mxu0 %v798_v5  ;;  %835 = vmatpush3.bf16.msra.mxu1 %v798_v5  ;;  %v225_v31 = vld [vmem:[%s1211_s26 + $0x98] sm:$0xff]  ;;  %v210_v32 = vld [vmem:[%s1211_s26 + $0x20] sm:$0xff]  ;;  %v211_v34 = vld [vmem:[%s1211_s26 + $0x28] sm:$0xff]  ;;  %p970_p3 = por %p969_p13, %p968_p10 }
  0x5e   : > { %803 = vmatprep.subr.bf16.mxu0 %v802_v8  ;;  %828 = vmatprep.subr.bf16.mxu1 %v802_v8  ;;  %v226_v33 = vld [vmem:[%s1211_s26 + $0xa0] sm:$0xff]  ;;  %v227_v35 = vld [vmem:[%s1211_s26 + $0xa8] sm:$0xff]  ;;  %v212_v36 = vld [vmem:[%s1211_s26 + $0x30] sm:$0xff] }
  0x5f   : > { %v228_v37 = vld [vmem:[%s1211_s26 + $0xb0] sm:$0xff]  ;;  %v213_v38 = vld [vmem:[%s1211_s26 + $0x38] sm:$0xff]  ;;  %v214_v40 = vld [vmem:[%s1211_s26 + $0x40] sm:$0xff]  ;;  %p971_p7 = pnand %p970_p3, %p964_p8 }
  0x60   : > { %v229_v39 = vld [vmem:[%s1211_s26 + $0xb8] sm:$0xff]  ;;  %v230_v41 = vld [vmem:[%s1211_s26 + $0xc0] sm:$0xff]  ;;  %v215_v42 = vld [vmem:[%s1211_s26 + $0x48] sm:$0xff] }
  0x61   : > { %805 = vmatpush3.bf16.msra.mxu0 %v802_v8  ;;  %836 = vmatpush3.bf16.msra.mxu1 %v802_v8  ;;  %v231_v43 = vld [vmem:[%s1211_s26 + $0xc8] sm:$0xff]  ;;  %v216_v44 = vld [vmem:[%s1211_s26 + $0x50] sm:$0xff]  ;;  %v217_v46 = vld [vmem:[%s1211_s26 + $0x58] sm:$0xff] }
  0x62   : > { %807 = vmatprep.subr.bf16.mxu0 %v806_v13  ;;  %829 = vmatprep.subr.bf16.mxu1 %v806_v13  ;;  %v232_v45 = vld [vmem:[%s1211_s26 + $0xd0] sm:$0xff]  ;;  %v233_v47 = vld [vmem:[%s1211_s26 + $0xd8] sm:$0xff]  ;;  %v218_v48 = vld [vmem:[%s1211_s26 + $0x60] sm:$0xff] }
  0x63   : > { %v234_v49 = vld [vmem:[%s1211_s26 + $0xe0] sm:$0xff]  ;;  %v219_v50 = vld [vmem:[%s1211_s26 + $0x68] sm:$0xff]  ;;  %v220_v52 = vld [vmem:[%s1211_s26 + $0x70] sm:$0xff] }
  0x64   : > { %v235_v51 = vld [vmem:[%s1211_s26 + $0xe8] sm:$0xff]  ;;  %v236_v53 = vld [vmem:[%s1211_s26 + $0xf0] sm:$0xff]  ;;  %v221_v54 = vld [vmem:[%s1211_s26 + $0x78] sm:$0xff] }
  0x65   : > { %809 = vmatpush3.bf16.msra.mxu0 %v806_v13  ;;  %837 = vmatpush3.bf16.msra.mxu1 %v806_v13  ;;  %v237_v55 = vld [vmem:[%s1211_s26 + $0xf8] sm:$0xff]  ;;  %v1256_v56 = vld [vmem:[%s1379_s2] ss:$0 sm:$0xff] }
  0x66   : > { %811 = vmatprep.subr.bf16.mxu0 %v810_v16  ;;  %830 = vmatprep.subr.bf16.mxu1 %v810_v16 }
  0x69   : > { %813 = vmatpush3.bf16.msra.mxu0 %v810_v16  ;;  %838 = vmatpush3.bf16.msra.mxu1 %v810_v16 }
  0x6a   : > { %815 = vmatprep.subr.bf16.mxu0 %v814_v19  ;;  %831 = vmatprep.subr.bf16.mxu1 %v814_v19 }
  0x6d   : > { %817 = vmatpush3.bf16.msra.mxu0 %v814_v19  ;;  %839 = vmatpush3.bf16.msra.mxu1 %v814_v19 }
  0x6e   : > { %819 = vmatprep.subr.bf16.mxu0 %v818_v22  ;;  %832 = vmatprep.subr.bf16.mxu1 %v818_v22 }
  0x71   : > { %821 = vmatpush3.bf16.msra.mxu0 %v818_v22  ;;  %840 = vmatpush3.bf16.msra.mxu1 %v818_v22 }
  0x72   : > { %823 = vmatprep.subr.bf16.mxu0 %v822_v25  ;;  %833 = vmatprep.subr.bf16.mxu1 %v822_v25 }
  0x75   : > { %825 = vmatpush3.bf16.msra.mxu0 %v822_v25  ;;  %841 = vmatpush3.bf16.msra.mxu1 %v822_v25 }
  0x78   : > { %747 = vmatmul.mubr.f32.vlgmr.msra.gmra.mrb[0].mxu0 %v207_v26  ;;  %771 = vmatmul.mubr.f32.vlgmr.msra.gmra.mrb[0].mxu1 %v223_v27 }
  0x79   : > { %749 = vmatprep.mubr.f32.mxu0 %v208_v28  ;;  %773 = vmatprep.mubr.f32.mxu1 %v224_v29 }
  0x7c   : > { %750 = vmatmul.mubr.f32.gmra.mrb[2].mxu0 %v209_v30  ;;  %774 = vmatmul.mubr.f32.gmra.mrb[2].mxu1 %v225_v31 }
  0x7d   : > { %752 = vmatprep.mubr.f32.mxu0 %v210_v32  ;;  %776 = vmatprep.mubr.f32.mxu1 %v226_v33 }
  0x80   : > { %753 = vmatmul.mubr.f32.gmra.mrb[4].mxu0 %v211_v34  ;;  %777 = vmatmul.mubr.f32.gmra.mrb[4].mxu1 %v227_v35 }
  0x81   : > { %755 = vmatprep.mubr.f32.mxu0 %v212_v36  ;;  %779 = vmatprep.mubr.f32.mxu1 %v228_v37 }
  0x84   : > { %756 = vmatmul.mubr.f32.gmra.mrb[6].mxu0 %v213_v38  ;;  %780 = vmatmul.mubr.f32.gmra.mrb[6].mxu1 %v229_v39 }
  0x85   : > { %758 = vmatprep.mubr.f32.mxu0 %v214_v40  ;;  %782 = vmatprep.mubr.f32.mxu1 %v230_v41 }
  0x88   : > { %759 = vmatmul.mubr.f32.gmra.mrb[8].mxu0 %v215_v42  ;;  %783 = vmatmul.mubr.f32.gmra.mrb[8].mxu1 %v231_v43 }
  0x89   : > { %761 = vmatprep.mubr.f32.mxu0 %v216_v44  ;;  %785 = vmatprep.mubr.f32.mxu1 %v232_v45 }
  0x8c   : > { %762 = vmatmul.mubr.f32.gmra.mrb[10].mxu0 %v217_v46  ;;  %786 = vmatmul.mubr.f32.gmra.mrb[10].mxu1 %v233_v47 }
  0x8d   : > { %764 = vmatprep.mubr.f32.mxu0 %v218_v48  ;;  %788 = vmatprep.mubr.f32.mxu1 %v234_v49 }
  0x90   : > { %765 = vmatmul.mubr.f32.gmra.mrb[12].mxu0 %v219_v50  ;;  %789 = vmatmul.mubr.f32.gmra.mrb[12].mxu1 %v235_v51 }
  0x91   : > { %767 = vmatprep.mubr.f32.mxu0 %v220_v52  ;;  %791 = vmatprep.mubr.f32.mxu1 %v236_v53 }
  0x94   : > { %768 = vmatmul.mubr.f32.gmra.mrb[14].mxu0 %v221_v54  ;;  %792 = vmatmul.mubr.f32.gmra.mrb[14].mxu1 %v237_v55 }
 0x14b   : > { %v748_v57 = vpop.f32.mrb[0].mxu0  ;;  %v772_v58 = vpop.f32.mrb[0].mxu1 }
 0x14c   : > { %v333_v59 = vadd.f32 %v748_v57, %v1256_v56  ;;  %v413_v60 = vadd.f32 %v772_v58, %v1256_v56  ;;  %v327_v61 = vpop.f32.mrb[1].mxu0  ;;  %v407_v62 = vpop.f32.mrb[1].mxu1 }
 0x14d   : > { %v328_v63 = vadd.f32 %v1256_v56, %v327_v61  ;;  %v408_v0 = vadd.f32 %v1256_v56, %v407_v62 }
 0x14e   : > { %v487_v1 = vmax.f32 %v333_v59, 0.0  ;;  %v503_v2 = vmax.f32 %v413_v60, 0.0 }
 0x14f   : > { %v486_v3 = vmax.f32 %v328_v63, 0.0  ;;  %v502_v4 = vmax.f32 %v408_v0, 0.0  ;;  %v751_v5 = vpop.f32.mrb[2].mxu0  ;;  %v775_v6 = vpop.f32.mrb[2].mxu1 }
 0x150   : > { %519 = vst [vmem:[%s1264_s8 + $0x8] sm:$0xff] %v487_v1  ;;  %535 = vst [vmem:[%s1264_s8 + $0x88] sm:$0xff] %v503_v2  ;;  %v343_v7 = vadd.f32 %v751_v5, %v1256_v56  ;;  %v423_v8 = vadd.f32 %v775_v6, %v1256_v56  ;;  %v337_v9 = vpop.f32.mrb[3].mxu0  ;;  %v417_v10 = vpop.f32.mrb[3].mxu1 }
 0x151   : > { %518 = vst [vmem:[%s1264_s8] sm:$0xff] %v486_v3  ;;  %534 = vst [vmem:[%s1264_s8 + $0x80] sm:$0xff] %v502_v4  ;;  %v338_v11 = vadd.f32 %v1256_v56, %v337_v9  ;;  %v418_v12 = vadd.f32 %v1256_v56, %v417_v10 }
 0x152   : > { %v489_v13 = vmax.f32 %v343_v7, 0.0  ;;  %v505_v14 = vmax.f32 %v423_v8, 0.0 }
 0x153   : > { %v488_v15 = vmax.f32 %v338_v11, 0.0  ;;  %v504_v16 = vmax.f32 %v418_v12, 0.0  ;;  %v754_v17 = vpop.f32.mrb[4].mxu0  ;;  %v778_v18 = vpop.f32.mrb[4].mxu1 }
 0x154   : > { %521 = vst [vmem:[%s1264_s8 + $0x18] sm:$0xff] %v489_v13  ;;  %537 = vst [vmem:[%s1264_s8 + $0x98] sm:$0xff] %v505_v14  ;;  %v353_v19 = vadd.f32 %v754_v17, %v1256_v56  ;;  %v433_v20 = vadd.f32 %v778_v18, %v1256_v56  ;;  %v347_v21 = vpop.f32.mrb[5].mxu0  ;;  %v427_v22 = vpop.f32.mrb[5].mxu1 }
 0x155   : > { %520 = vst [vmem:[%s1264_s8 + $0x10] sm:$0xff] %v488_v15  ;;  %536 = vst [vmem:[%s1264_s8 + $0x90] sm:$0xff] %v504_v16  ;;  %v348_v23 = vadd.f32 %v1256_v56, %v347_v21  ;;  %v428_v24 = vadd.f32 %v1256_v56, %v427_v22 }
 0x156   : > { %v491_v25 = vmax.f32 %v353_v19, 0.0  ;;  %v507_v26 = vmax.f32 %v433_v20, 0.0 }
 0x157   : > { %v490_v27 = vmax.f32 %v348_v23, 0.0  ;;  %v506_v28 = vmax.f32 %v428_v24, 0.0  ;;  %v757_v29 = vpop.f32.mrb[6].mxu0  ;;  %v781_v30 = vpop.f32.mrb[6].mxu1 }
 0x158   : > { %523 = vst [vmem:[%s1264_s8 + $0x28] sm:$0xff] %v491_v25  ;;  %539 = vst [vmem:[%s1264_s8 + $0xa8] sm:$0xff] %v507_v26  ;;  %v363_v31 = vadd.f32 %v757_v29, %v1256_v56  ;;  %v443_v32 = vadd.f32 %v781_v30, %v1256_v56  ;;  %v357_v33 = vpop.f32.mrb[7].mxu0  ;;  %v437_v34 = vpop.f32.mrb[7].mxu1 }
 0x159   : > { %522 = vst [vmem:[%s1264_s8 + $0x20] sm:$0xff] %v490_v27  ;;  %538 = vst [vmem:[%s1264_s8 + $0xa0] sm:$0xff] %v506_v28  ;;  %v358_v35 = vadd.f32 %v1256_v56, %v357_v33  ;;  %v438_v36 = vadd.f32 %v1256_v56, %v437_v34 }
 0x15a   : > { %v493_v37 = vmax.f32 %v363_v31, 0.0  ;;  %v509_v38 = vmax.f32 %v443_v32, 0.0 }
 0x15b   : > { %v492_v39 = vmax.f32 %v358_v35, 0.0  ;;  %v508_v40 = vmax.f32 %v438_v36, 0.0  ;;  %v760_v41 = vpop.f32.mrb[8].mxu0  ;;  %v784_v42 = vpop.f32.mrb[8].mxu1 }
 0x15c   : > { %525 = vst [vmem:[%s1264_s8 + $0x38] sm:$0xff] %v493_v37  ;;  %541 = vst [vmem:[%s1264_s8 + $0xb8] sm:$0xff] %v509_v38  ;;  %v373_v43 = vadd.f32 %v760_v41, %v1256_v56  ;;  %v453_v44 = vadd.f32 %v784_v42, %v1256_v56  ;;  %v367_v45 = vpop.f32.mrb[9].mxu0  ;;  %v447_v46 = vpop.f32.mrb[9].mxu1 }
 0x15d   : > { %524 = vst [vmem:[%s1264_s8 + $0x30] sm:$0xff] %v492_v39  ;;  %540 = vst [vmem:[%s1264_s8 + $0xb0] sm:$0xff] %v508_v40  ;;  %v368_v47 = vadd.f32 %v1256_v56, %v367_v45  ;;  %v448_v48 = vadd.f32 %v1256_v56, %v447_v46 }
 0x15e   : > { %v495_v49 = vmax.f32 %v373_v43, 0.0  ;;  %v511_v50 = vmax.f32 %v453_v44, 0.0 }
 0x15f   : > { %v494_v51 = vmax.f32 %v368_v47, 0.0  ;;  %v510_v52 = vmax.f32 %v448_v48, 0.0  ;;  %v763_v53 = vpop.f32.mrb[10].mxu0  ;;  %v787_v54 = vpop.f32.mrb[10].mxu1 }
 0x160   : > { %527 = vst [vmem:[%s1264_s8 + $0x48] sm:$0xff] %v495_v49  ;;  %543 = vst [vmem:[%s1264_s8 + $0xc8] sm:$0xff] %v511_v50  ;;  %v383_v55 = vadd.f32 %v763_v53, %v1256_v56  ;;  %v463_v57 = vadd.f32 %v787_v54, %v1256_v56  ;;  %v377_v58 = vpop.f32.mrb[11].mxu0  ;;  %v457_v59 = vpop.f32.mrb[11].mxu1 }
 0x161   : > { %526 = vst [vmem:[%s1264_s8 + $0x40] sm:$0xff] %v494_v51  ;;  %542 = vst [vmem:[%s1264_s8 + $0xc0] sm:$0xff] %v510_v52  ;;  %v378_v60 = vadd.f32 %v1256_v56, %v377_v58  ;;  %v458_v61 = vadd.f32 %v1256_v56, %v457_v59 }
 0x162   : > { %v497_v62 = vmax.f32 %v383_v55, 0.0  ;;  %v513_v63 = vmax.f32 %v463_v57, 0.0 }
 0x163   : > { %v496_v0 = vmax.f32 %v378_v60, 0.0  ;;  %v512_v1 = vmax.f32 %v458_v61, 0.0  ;;  %v766_v2 = vpop.f32.mrb[12].mxu0  ;;  %v790_v3 = vpop.f32.mrb[12].mxu1 }
 0x164   : > { %529 = vst [vmem:[%s1264_s8 + $0x58] sm:$0xff] %v497_v62  ;;  %545 = vst [vmem:[%s1264_s8 + $0xd8] sm:$0xff] %v513_v63  ;;  %v393_v4 = vadd.f32 %v766_v2, %v1256_v56  ;;  %v473_v5 = vadd.f32 %v790_v3, %v1256_v56  ;;  %v387_v6 = vpop.f32.mrb[13].mxu0  ;;  %v467_v7 = vpop.f32.mrb[13].mxu1 }
 0x165   : > { %528 = vst [vmem:[%s1264_s8 + $0x50] sm:$0xff] %v496_v0  ;;  %544 = vst [vmem:[%s1264_s8 + $0xd0] sm:$0xff] %v512_v1  ;;  %v388_v8 = vadd.f32 %v1256_v56, %v387_v6  ;;  %v468_v9 = vadd.f32 %v1256_v56, %v467_v7 }
 0x166   : > { %v499_v10 = vmax.f32 %v393_v4, 0.0  ;;  %v515_v11 = vmax.f32 %v473_v5, 0.0 }
 0x167   : > { %v498_v12 = vmax.f32 %v388_v8, 0.0  ;;  %v514_v13 = vmax.f32 %v468_v9, 0.0  ;;  %v769_v14 = vpop.f32.mrb[14].mxu0  ;;  %v793_v15 = vpop.f32.mrb[14].mxu1 }
 0x168   : > { %531 = vst [vmem:[%s1264_s8 + $0x68] sm:$0xff] %v499_v10  ;;  %547 = vst [vmem:[%s1264_s8 + $0xe8] sm:$0xff] %v515_v11  ;;  %v403_v16 = vadd.f32 %v769_v14, %v1256_v56  ;;  %v483_v17 = vadd.f32 %v793_v15, %v1256_v56  ;;  %v397_v18 = vpop.f32.mrb[15].mxu0  ;;  %v477_v19 = vpop.f32.mrb[15].mxu1 }
 0x169   : > { %530 = vst [vmem:[%s1264_s8 + $0x60] sm:$0xff] %v498_v12  ;;  %546 = vst [vmem:[%s1264_s8 + $0xe0] sm:$0xff] %v514_v13  ;;  %v398_v20 = vadd.f32 %v1256_v56, %v397_v18  ;;  %v478_v21 = vadd.f32 %v1256_v56, %v477_v19 }
 0x16a   : > { %v501_v22 = vmax.f32 %v403_v16, 0.0  ;;  %v517_v23 = vmax.f32 %v483_v17, 0.0 }
 0x16b   : > { %v500_v24 = vmax.f32 %v398_v20, 0.0  ;;  %v516_v25 = vmax.f32 %v478_v21, 0.0 }
 0x16c   : > { %533 = vst [vmem:[%s1264_s8 + $0x78] sm:$0xff] %v501_v22  ;;  %549 = vst [vmem:[%s1264_s8 + $0xf8] sm:$0xff] %v517_v23 }
 0x16d   : > { %532 = vst [vmem:[%s1264_s8 + $0x70] sm:$0xff] %v500_v24  ;;  %548 = vst [vmem:[%s1264_s8 + $0xf0] sm:$0xff] %v516_v25 }
 0x16e   : > { %974 = shalt.err (!%p971_p7)
}
 0x16f   : > { %s975_s30 = scalar_lea.hbm %s1327_s5, 4096  ;;  %s979_s10 = scalar_lea.hbm %s1380_s3, 8192 }
 0x170   : > { %p976_p9 = scmp.ne.s32.totalorder %s1327_s5, %s975_s30  ;;  %p980_p5 = scmp.lt.u32.totalorder %s1327_s5, %s1380_s3 }
 0x171   : > { %p981_p11 = scmp.lt.u32.totalorder %s979_s10, %s975_s30  ;;  %p983_p4 = scmp.lt.u32.totalorder %s975_s30, %s1327_s5 }
 0x172   : > { %p977_p1 = pnand %p976_p9, %p1154_p12 }
 0x173   : > { %p982_p2 = por %p981_p11, %p980_p5 }
 0x174   : > { %p978_p0 = pneg %p977_p1 }
 0x175   : > { %p984_p6 = por %p983_p4, %p982_p2 }
 0x177   : > { %p985_p8 = pnand %p984_p6, %p978_p0 }
 0x179   : > { %988 = shalt.err (!%p985_p8)
}
 0x17a   : > { %s1038_s20 = smov 128   ;;  %s1039_s8 = smov 8  }
 0x17b   : > { %848 = dma.vmem_to_hbm [thread:$0]  (%p1154_p12), %s1329_s4, 4096, %s1327_s5, %s551_s11, %s1038_s20, %s1038_s20, %s1039_s8  }
 0x17c PF: > { %s579_s9 = sand.u32 1, %s1019_s12   ;;  %p1395_p10 = scmp.ne.s32.totalorder %s1385_s19, 0 }
 0x17d   : > { %p1396_p13 = scmp.ge.s32.totalorder %s1031_s15, 2  ;;  %s580_s16 = scalar_lea.sflag [#allocation4], %s579_s9 }
 0x17f   : > { %p859_p3 = pnand %p1396_p13, %p1395_p10 }
 0x181   : > { %1014 = dma.done.wait (!%p859_p3), %s580_s16, 4096  }
 0x182   : > { %1016 = vsyncadd (!%p859_p3), %s580_s16, 4294963200  ;;  %p17_p7 = scmp.ge.s32.totalorder %s1116_s24, 4   ;;  %s1397_s12 = smov %s1023_s13 }
 0x183   : > { %s1398_s13 = smov %s1027_s14  ;;  %s1399_s14 = smov %s1150_s17 }
 0x184   : > { %s1400_s15 = smov %s1116_s24  ;;  %19 = sbr.rel (!%p17_p7) target bundleno = 6 (0x6), region = 81 }
 0x18b   :  { %585 = vsyncpa [#allocation3], 1 }
 0x18c   :  { %587 = vsyncpa [#allocation3 + $0x1], 1 }
 0x18d   :  { %588 = vsyncpa [#allocation6], 1 }
 0x18e   :  { %589 = vsyncpa [#allocation4], 1 }
 0x18f   :  { %591 = vsyncpa [#allocation4 + $0x1], 1 }

</bundles_post_ra>
